<compile_context>
chip_gen: v7x
topology: tpu7x:2x2x1
jax: 0.10.0
libtpu: 0.0.40
codegen_flags: <defaults>
</compile_context>

<pallas_src>
import functools

import jax
import jax.numpy as jnp
from jax.experimental import pallas as pl
from jax.experimental.pallas import tpu as pltpu

LANE = 128
SUBLANE = 8
NEG_SLOPE = 0.01  # nn.LeakyReLU() default


def _round_up(n, m):
    return ((n + m - 1) // m) * m


def _leaky_relu(x, slope=NEG_SLOPE):
    return jnp.where(x >= 0, x, slope * x)


def mlp_kernel(x_ref, w1_ref, b1_ref, w2_ref, b2_ref, w3_ref, b3_ref, o_ref):
    """Fused 3-layer MLP for one (TILE_B, in_dim) batch tile.

    Layer 1: f32 MXU dot (K = in_dim, tiny).  Layers 2/3: bf16 operands
    (weights pre-cast), f32 accumulation.  Bias / leaky-relu on the VPU,
    tanh on the EUP.  Output is stored at native width.
    """
    x = x_ref[...]                                             # (tb, in_d) f32
    h = jnp.dot(x, w1_ref[...], preferred_element_type=jnp.float32)
    h = _leaky_relu(h + b1_ref[...])                           # (tb, h1_p) f32

    h = jnp.dot(h.astype(jnp.bfloat16), w2_ref[...],
                preferred_element_type=jnp.float32)
    h = _leaky_relu(h + b2_ref[...])                           # (tb, h2_p) f32

    h = jnp.dot(h.astype(jnp.bfloat16), w3_ref[...],
                preferred_element_type=jnp.float32)
    o_ref[...] = jnp.tanh(h + b3_ref[...]).astype(o_ref.dtype)  # (tb, out_d)


def _pad2d(a, rows, cols):
    return jnp.pad(a, ((0, rows - a.shape[0]), (0, cols - a.shape[1])))


def prepare_params(params):
    """Pad only the hidden dims (VMEM-resident weights); keep I/O dims native.

    w1 stays f32 (layer 1 runs in f32); w2/w3 are pre-cast to bf16 so the
    kernel does no per-iteration weight casts.
    """
    in_d, h1 = params["w1"].shape
    _, h2 = params["w2"].shape
    _, out_d = params["w3"].shape
    h1_p = _round_up(h1, LANE)
    h2_p = _round_up(h2, LANE)
    return {
        "w1": _pad2d(params["w1"], in_d, h1_p),                        # f32
        "b1": _pad2d(params["b1"], 1, h1_p),                           # f32
        "w2": _pad2d(params["w2"], h1_p, h2_p).astype(jnp.bfloat16),   # bf16
        "b2": _pad2d(params["b2"], 1, h2_p),                           # f32
        "w3": _pad2d(params["w3"], h2_p, out_d).astype(jnp.bfloat16),  # bf16
        "b3": params["b3"],                                            # f32
    }


@functools.partial(jax.jit, static_argnames=("tile_b",))
def mlp_forward(x, padded_params, *, tile_b=4096):
    """x: (B, input_dim) float32; padded_params: output of prepare_params."""
    B, in_dim = x.shape
    p = padded_params
    h1_p = p["w1"].shape[1]
    h2_p = p["w2"].shape[1]
    out_d = p["w3"].shape[1]

    # Adaptive batch tile: keep tiles <= tile_b rows, but use >= 2 grid steps
    # when possible so the "parallel" axis shards across both v7x TensorCores
    # (no-op on v5e/v6e).  Tiles stay a multiple of the 8-row sublane.
    b8 = _round_up(B, SUBLANE)
    n_steps = max(pl.cdiv(b8, tile_b), 2 if b8 > SUBLANE else 1)
    tb = _round_up(pl.cdiv(b8, n_steps), SUBLANE)
    bp = _round_up(b8, tb)

    # Batch-only padding (no column padding).  Waste is bounded by the
    # adaptive tile choice above.
    x_p = jnp.pad(x, ((0, bp - B), (0, 0))) if bp != B else x

    const = lambda i: (0, 0)  # weights/biases: single block, VMEM-resident

    # Advisory cost (narrow-I/O byte counts; kernel is HBM-bound).
    flops = 2 * bp * (in_dim * h1_p + h1_p * h2_p + h2_p * out_d)
    bytes_accessed = (x_p.size + bp * out_d) * 4 + sum(
        int(v.size) * v.dtype.itemsize for v in p.values())

    out = pl.pallas_call(
        mlp_kernel,
        out_shape=jax.ShapeDtypeStruct((bp, out_d), jnp.float32),
        grid_spec=pltpu.PrefetchScalarGridSpec(
            num_scalar_prefetch=0,
            grid=(bp // tb,),
            in_specs=[
                pl.BlockSpec((tb, in_dim), lambda i: (i, 0)),  # native width
                pl.BlockSpec(p["w1"].shape, const),
                pl.BlockSpec(p["b1"].shape, const),
                pl.BlockSpec(p["w2"].shape, const),
                pl.BlockSpec(p["b2"].shape, const),
                pl.BlockSpec(p["w3"].shape, const),
                pl.BlockSpec(p["b3"].shape, const),
            ],
            out_specs=pl.BlockSpec((tb, out_d), lambda i: (i, 0)),  # native
        ),
        compiler_params=pltpu.CompilerParams(
            dimension_semantics=("parallel",),
            # Comfortable headroom even on v7x's 64 MiB VMEM; actual usage
            # with the narrow layout is only a few MiB at tb=4096.
            vmem_limit_bytes=48 * 1024 * 1024),
        cost_estimate=pl.CostEstimate(
            flops=flops,
            transcendentals=bp * out_d,
            bytes_accessed=bytes_accessed),
    )(x_p, p["w1"], p["b1"], p["w2"], p["b2"], p["w3"], p["b3"])

    return out[:B]  # columns are already native width; only trim batch pad


def init_params(key, input_dim, hidden_dim, output_dim, max_dim=1024):
    """Deterministic parameter init (stand-in for weight_init in PyTorch)."""
    h2 = min(max_dim, 2 * hidden_dim)
    dims = [(input_dim, hidden_dim), (hidden_dim, h2), (h2, output_dim)]
    params = {}
    for i, (fan_in, fan_out) in enumerate(dims, start=1):
        key, wk, bk = jax.random.split(key, 3)
        scale = 1.0 / jnp.sqrt(jnp.float32(fan_in))
        # stored as (in, out) so the kernel does x @ W (PyTorch does x @ W.T)
        params[f"w{i}"] = jax.random.uniform(
            wk, (fan_in, fan_out), jnp.float32, -scale, scale)
        params[f"b{i}"] = jax.random.uniform(
            bk, (1, fan_out), jnp.float32, -scale, scale)
    return params


def reference_forward(x, params):
    """Pure-JAX f32 reference of the same forward pass."""
    h = _leaky_relu(x @ params["w1"] + params["b1"])
    h = _leaky_relu(h @ params["w2"] + params["b2"])
    return jnp.tanh(h @ params["w3"] + params["b3"])


if __name__ == "__main__":
    key = jax.random.PRNGKey(0)
    key, pkey, xkey = jax.random.split(key, 3)

    # Small shapes; B deliberately not a multiple of the tile to exercise the
    # batch-pad path and the >=2-step grid selection.
    B, input_dim, hidden_dim, output_dim = 50, 16, 32, 8
    params = init_params(pkey, input_dim, hidden_dim, output_dim)
    x = jax.random.normal(xkey, (B, input_dim), jnp.float32)

    padded_params = prepare_params(params)
    out = mlp_forward(x, padded_params)
    out = jax.block_until_ready(out)

    ref = reference_forward(x, params)
    assert out.shape == (B, output_dim)
    # Layers 2/3 use bf16 MXU operands with f32 accumulation -> relaxed tol.
    assert jnp.allclose(out, ref, atol=3e-2, rtol=3e-2), (
        float(jnp.max(jnp.abs(out - ref))))
    print("KERNEL_OK")
</pallas_src>

<mosaic_0001>
module attributes {stable_mosaic.version = 11 : i64} {
  func.func @mlp_kernel(%arg0: i32, %arg1: memref<32x16xf32, #tpu.memory_space<vmem>>, %arg2: memref<16x128xf32, #tpu.memory_space<vmem>>, %arg3: memref<1x128xf32, #tpu.memory_space<vmem>>, %arg4: memref<128x128xbf16, #tpu.memory_space<vmem>>, %arg5: memref<1x128xf32, #tpu.memory_space<vmem>>, %arg6: memref<128x8xbf16, #tpu.memory_space<vmem>>, %arg7: memref<1x8xf32, #tpu.memory_space<vmem>>, %arg8: memref<32x8xf32, #tpu.memory_space<vmem>>) attributes {dimension_semantics = [#tpu.dimension_semantics<parallel>], iteration_bounds = array<i64: 2>, scalar_prefetch = 0 : i64, scratch_operands = 0 : i64, tpu.core_type = #tpu.core_type<tc>, window_params = [{transform_indices = @transform_0, window_bounds = array<i64: 32, 16>}, {pipeline_mode = #tpu.pipeline_mode<synchronous>, transform_indices = @transform_1, window_bounds = array<i64: 16, 128>}, {pipeline_mode = #tpu.pipeline_mode<synchronous>, transform_indices = @transform_2, window_bounds = array<i64: 1, 128>}, {pipeline_mode = #tpu.pipeline_mode<synchronous>, transform_indices = @transform_3, window_bounds = array<i64: 128, 128>}, {pipeline_mode = #tpu.pipeline_mode<synchronous>, transform_indices = @transform_4, window_bounds = array<i64: 1, 128>}, {pipeline_mode = #tpu.pipeline_mode<synchronous>, transform_indices = @transform_5, window_bounds = array<i64: 128, 8>}, {pipeline_mode = #tpu.pipeline_mode<synchronous>, transform_indices = @transform_6, window_bounds = array<i64: 1, 8>}, {transform_indices = @transform_7, window_bounds = array<i64: 32, 8>}]} {
    %c0 = arith.constant 0 : index
    %c0_0 = arith.constant 0 : index
    %0 = vector.load %arg1[%c0, %c0_0] : memref<32x16xf32, #tpu.memory_space<vmem>>, vector<32x16xf32>
    %c0_1 = arith.constant 0 : index
    %c0_2 = arith.constant 0 : index
    %1 = vector.load %arg2[%c0_1, %c0_2] : memref<16x128xf32, #tpu.memory_space<vmem>>, vector<16x128xf32>
    %cst = arith.constant dense<0.000000e+00> : vector<32x128xf32>
    %2 = tpu.matmul %0, %1, %cst {dimension_numbers = #tpu.dot_dimension_numbers<[1], [0], [0], [1], [0, 0, 1, 1], [], []>} : vector<32x16xf32>, vector<16x128xf32>, vector<32x128xf32> -> vector<32x128xf32>
    %c0_3 = arith.constant 0 : index
    %c0_4 = arith.constant 0 : index
    %3 = vector.load %arg3[%c0_3, %c0_4] : memref<1x128xf32, #tpu.memory_space<vmem>>, vector<1x128xf32>
    %4 = vector.broadcast %3 : vector<1x128xf32> to vector<32x128xf32>
    %5 = arith.addf %2, %4 : vector<32x128xf32>
    %cst_5 = arith.constant 0.000000e+00 : f32
    %6 = vector.broadcast %cst_5 : f32 to vector<32x128xf32>
    %7 = arith.cmpf oge, %5, %6 : vector<32x128xf32>
    %cst_6 = arith.constant 0.00999999977 : f32
    %8 = vector.broadcast %cst_6 : f32 to vector<32x128xf32>
    %9 = arith.mulf %8, %5 : vector<32x128xf32>
    %10 = arith.select %7, %5, %9 : vector<32x128xi1>, vector<32x128xf32>
    %11 = arith.truncf %10 : vector<32x128xf32> to vector<32x128xbf16>
    %c0_7 = arith.constant 0 : index
    %c0_8 = arith.constant 0 : index
    %12 = vector.load %arg4[%c0_7, %c0_8] : memref<128x128xbf16, #tpu.memory_space<vmem>>, vector<128x128xbf16>
    %cst_9 = arith.constant dense<0.000000e+00> : vector<32x128xf32>
    %13 = tpu.matmul %11, %12, %cst_9 {dimension_numbers = #tpu.dot_dimension_numbers<[1], [0], [0], [1], [0, 0, 1, 1], [], []>} : vector<32x128xbf16>, vector<128x128xbf16>, vector<32x128xf32> -> vector<32x128xf32>
    %c0_10 = arith.constant 0 : index
    %c0_11 = arith.constant 0 : index
    %14 = vector.load %arg5[%c0_10, %c0_11] : memref<1x128xf32, #tpu.memory_space<vmem>>, vector<1x128xf32>
    %15 = vector.broadcast %14 : vector<1x128xf32> to vector<32x128xf32>
    %16 = arith.addf %13, %15 : vector<32x128xf32>
    %cst_12 = arith.constant 0.000000e+00 : f32
    %17 = vector.broadcast %cst_12 : f32 to vector<32x128xf32>
    %18 = arith.cmpf oge, %16, %17 : vector<32x128xf32>
    %cst_13 = arith.constant 0.00999999977 : f32
    %19 = vector.broadcast %cst_13 : f32 to vector<32x128xf32>
    %20 = arith.mulf %19, %16 : vector<32x128xf32>
    %21 = arith.select %18, %16, %20 : vector<32x128xi1>, vector<32x128xf32>
    %22 = arith.truncf %21 : vector<32x128xf32> to vector<32x128xbf16>
    %c0_14 = arith.constant 0 : index
    %c0_15 = arith.constant 0 : index
    %23 = vector.load %arg6[%c0_14, %c0_15] : memref<128x8xbf16, #tpu.memory_space<vmem>>, vector<128x8xbf16>
    %cst_16 = arith.constant dense<0.000000e+00> : vector<32x8xf32>
    %24 = tpu.matmul %22, %23, %cst_16 {dimension_numbers = #tpu.dot_dimension_numbers<[1], [0], [0], [1], [0, 0, 1, 1], [], []>} : vector<32x128xbf16>, vector<128x8xbf16>, vector<32x8xf32> -> vector<32x8xf32>
    %c0_17 = arith.constant 0 : index
    %c0_18 = arith.constant 0 : index
    %25 = vector.load %arg7[%c0_17, %c0_18] : memref<1x8xf32, #tpu.memory_space<vmem>>, vector<1x8xf32>
    %26 = vector.broadcast %25 : vector<1x8xf32> to vector<32x8xf32>
    %27 = arith.addf %24, %26 : vector<32x8xf32>
    %28 = math.tanh %27 : vector<32x8xf32>
    %c0_19 = arith.constant 0 : index
    %c0_20 = arith.constant 0 : index
    %29 = vector.load %arg8[%c0_19, %c0_20] : memref<32x8xf32, #tpu.memory_space<vmem>>, vector<32x8xf32>
    tpu.vector_store %arg8[%c0_19, %c0_20], %28 {strides = array<i32>} : memref<32x8xf32, #tpu.memory_space<vmem>>, vector<32x8xf32>,
    return
  }
  func.func @transform_0(%arg0: i32) -> (i32, i32) {
    %c0_i32 = arith.constant 0 : i32
    %c0_i32_0 = arith.constant 0 : i32
    return %arg0, %c0_i32 : i32, i32
  }
  func.func @transform_1(%arg0: i32) -> (i32, i32) {
    %c0_i32 = arith.constant 0 : i32
    %c0_i32_0 = arith.constant 0 : i32
    %c0_i32_1 = arith.constant 0 : i32
    return %c0_i32, %c0_i32_0 : i32, i32
  }
  func.func @transform_2(%arg0: i32) -> (i32, i32) {
    %c0_i32 = arith.constant 0 : i32
    %c0_i32_0 = arith.constant 0 : i32
    %c0_i32_1 = arith.constant 0 : i32
    return %c0_i32, %c0_i32_0 : i32, i32
  }
  func.func @transform_3(%arg0: i32) -> (i32, i32) {
    %c0_i32 = arith.constant 0 : i32
    %c0_i32_0 = arith.constant 0 : i32
    %c0_i32_1 = arith.constant 0 : i32
    return %c0_i32, %c0_i32_0 : i32, i32
  }
  func.func @transform_4(%arg0: i32) -> (i32, i32) {
    %c0_i32 = arith.constant 0 : i32
    %c0_i32_0 = arith.constant 0 : i32
    %c0_i32_1 = arith.constant 0 : i32
    return %c0_i32, %c0_i32_0 : i32, i32
  }
  func.func @transform_5(%arg0: i32) -> (i32, i32) {
    %c0_i32 = arith.constant 0 : i32
    %c0_i32_0 = arith.constant 0 : i32
    %c0_i32_1 = arith.constant 0 : i32
    return %c0_i32, %c0_i32_0 : i32, i32
  }
  func.func @transform_6(%arg0: i32) -> (i32, i32) {
    %c0_i32 = arith.constant 0 : i32
    %c0_i32_0 = arith.constant 0 : i32
    %c0_i32_1 = arith.constant 0 : i32
    return %c0_i32, %c0_i32_0 : i32, i32
  }
  func.func @transform_7(%arg0: i32) -> (i32, i32) {
    %c0_i32 = arith.constant 0 : i32
    %c0_i32_0 = arith.constant 0 : i32
    return %arg0, %c0_i32 : i32, i32
  }
}

</mosaic_0001>

<bundles_post_ra>
// kernel: mlp_forward.1
= control target key start
LH: loop header
LB: loop body
LE: loop exit
PB: predicated region body
PF: predicated region fallthrough
CT: control target
= control target key end

     0   :  { %s921_s24 = smov 0   ;;  %s1012_s0 = inlined_call_operand.vmem [shape: f32[64,16], index: 0, kind: input, shape index: {}]   ;;  %s1013_s1 = inlined_call_operand.vmem [shape: f32[16,128], index: 1, kind: input, shape index: {}]   ;;  %s1014_s2 = inlined_call_operand.vmem [shape: f32[1,128], index: 2, kind: input, shape index: {}]   ;;  %s1015_s3 = inlined_call_operand.vmem [shape: bf16[128,128], index: 3, kind: input, shape index: {}]   ;;  %s1016_s4 = inlined_call_operand.vmem [shape: f32[1,128], index: 4, kind: input, shape index: {}]   ;;  %s1017_s5 = inlined_call_operand.vmem [shape: bf16[128,8], index: 5, kind: input, shape index: {}]   ;;  %s1018_s6 = inlined_call_operand.vmem [shape: f32[1,8], index: 6, kind: input, shape index: {}]   ;;  %s1019_s7 = inlined_call_operand.vmem [shape: f32[64,8], index: 7, kind: output, shape index: {}]  }
   0x1 LB: > { %s727_s25 = sadd.s32 4294967295, %s879_s24   ;;  %p731_p0 = scmp.ge.s32.totalorder %s879_s24, 1  ;;  %s879_s24 = sphi %s921_s24, %s17_s24  }
   0x2   : > { %p238_p1 = scmp.lt.s32.totalorder %s879_s24, 3 }
   0x4   : > { %p239_p2 = pnand %p731_p0, %p238_p1 }
   0x5   : > { %v287_v0 = vld [vmem:[%s1013_s1] sm:$0xff] (!%p239_p2)  ;;  %v288_v1 = vld [vmem:[%s1013_s1 + $0x8] sm:$0xff] (!%p239_p2)  ;;  %s732_s30 = sshll.u32 (!%p239_p2), %s727_s25, 2  ;;  %vm296_vm0 = vcmask (!%p239_p2), 130048   ;;  %v851_v5 = vld [vmem:[%s1015_s3 + $0x10] sm:$0xff] (!%p239_p2)   ;;  %vm666_vm9 = vcmask (!%p239_p2), 64512  }
   0x6   : > { %242 = sbr.rel (%p239_p2) target bundleno = 696 (0x2b8), region = 48  ;;  %v837_v2 = vpack.c.bf16 (!%p239_p2), %v288_v1, %v287_v0  ;;  %p271_p3 = scmp.lt.s32.totalorder (!%p239_p2), %s732_s30, 7  ;;  %v849_v3 = vld [vmem:[%s1015_s3] sm:$0xff] (!%p239_p2)   ;;  %v850_v4 = vld [vmem:[%s1015_s3 + $0x8] sm:$0xff] (!%p239_p2)   ;;  %v852_v9 = vld [vmem:[%s1015_s3 + $0x18] sm:$0xff] (!%p239_p2)  }
   0x7   : > { %797 = vmatprep.subr.bf16.mxu1 (!%p239_p2), %v849_v3  ;;  %v853_v11 = vld [vmem:[%s1015_s3 + $0x20] sm:$0xff] (!%p239_p2)   ;;  %v854_v12 = vld [vmem:[%s1015_s3 + $0x28] sm:$0xff] (!%p239_p2)   ;;  %v855_v13 = vld [vmem:[%s1015_s3 + $0x30] sm:$0xff] (!%p239_p2)  }
   0x8   : > { %838 = vmatprep.subr.bf16.mxu0 (!%p239_p2), %v837_v2  ;;  %798 = vmatpush3.bf16.msra.mxu1 (!%p239_p2), %v849_v3  ;;  %v856_v14 = vld [vmem:[%s1015_s3 + $0x38] sm:$0xff] (!%p239_p2)   ;;  %v857_v15 = vld [vmem:[%s1017_s5] sm:$0xff] (!%p239_p2)   ;;  %v858_v16 = vld [vmem:[%s1017_s5 + $0x8] sm:$0xff] (!%p239_p2)  }
   0x9   : > { %840 = vmatpush3.bf16.msra.mxu0 (!%p239_p2), %v837_v2  ;;  %799 = vmatprep.subr.bf16.mxu1 (!%p239_p2), %v850_v4  ;;  %v859_v17 = vld [vmem:[%s1017_s5 + $0x10] sm:$0xff] (!%p239_p2)   ;;  %v860_v18 = vld [vmem:[%s1017_s5 + $0x18] sm:$0xff] (!%p239_p2)   ;;  %v861_v19 = vld [vmem:[%s1017_s5 + $0x20] sm:$0xff] (!%p239_p2)  }
   0xa   : > { %817 = vmatprep.subr.bf16.mxu0 (!%p239_p2), %v857_v15  ;;  %v736_v20 = vld [vmem:[%s1014_s2] ss:$0 sm:$0xff] (!%p239_p2)  ;;  %v862_v39 = vld [vmem:[%s1017_s5 + $0x28] sm:$0xff] (!%p239_p2)   ;;  %v863_v40 = vld [vmem:[%s1017_s5 + $0x30] sm:$0xff] (!%p239_p2)  }
   0xb   : > { %v864_v41 = vld [vmem:[%s1017_s5 + $0x38] sm:$0xff] (!%p239_p2)   ;;  %v741_v42 = vld [vmem:[%s1016_s4] ss:$0 sm:$0xff] (!%p239_p2) }
   0xc   : > { %800 = vmatpush3.bf16.msra.mxu1 (!%p239_p2), %v850_v4  ;;  %v750_v61 = vld [vmem:[%s1018_s6] ss:$0 sm:$0xff] (!%p239_p2) }
   0xd   : > { %s1021_s30 = smov (!%p271_p3, %s732_s30), 7  ;;  %801 = vmatprep.subr.bf16.mxu1 %v851_v5 }
   0xe   : > { %s733_s12 = sshll.u32 %s1021_s30, 3 }
   0xf   : > { %s274_s17 = scalar_lea.vmem %s1012_s0, %s733_s12  ;;  %s280_s11 = scalar_lea.vmem %s1019_s7, %s733_s12 }
  0x10   : > { %v283_v6 = vld [vmem:[%s274_s17] sm:$0xff]  ;;  %v284_v7 = vld [vmem:[%s274_s17 + $0x8] sm:$0xff]  ;;  %v285_v8 = vld [vmem:[%s274_s17 + $0x10] sm:$0xff]  ;;  %802 = vmatpush3.bf16.msra.mxu1 %v851_v5 }
  0x11   : > { %791 = vmatprep.mubr.msk.f32.mxu0 %vm296_vm0, %v283_v6  ;;  %v286_v10 = vld [vmem:[%s274_s17 + $0x18] sm:$0xff]  ;;  %803 = vmatprep.subr.bf16.mxu1 %v852_v9 }
  0x12   : > { %792 = vmatmul.mubr.msk.f32.vlgmr.msra.gmra.mrb[0].mxu0 %vm296_vm0, %v284_v7 }
  0x13   : > { %794 = vmatprep.mubr.msk.f32.mxu0 %vm296_vm0, %v285_v8  ;;  %818 = vmatpush3.bf16.msra.mxu0 %v857_v15 }
  0x14   : > { %804 = vmatpush3.bf16.msra.mxu1 %v852_v9  ;;  %819 = vmatprep.subr.bf16.mxu0 %v858_v16 }
  0x15   : > { %805 = vmatprep.subr.bf16.mxu1 %v853_v11 }
  0x16   : > { %795 = vmatmul.mubr.msk.f32.gmra.mrb[2].mxu0 %vm296_vm0, %v286_v10 }
  0x17   : > { %820 = vmatpush3.bf16.msra.mxu0 %v858_v16 }
  0x18   : > { %806 = vmatpush3.bf16.msra.mxu1 %v853_v11  ;;  %821 = vmatprep.subr.bf16.mxu0 %v859_v17 }
  0x19   : > { %807 = vmatprep.subr.bf16.mxu1 %v854_v12 }
  0x1b   : > { %822 = vmatpush3.bf16.msra.mxu0 %v859_v17 }
  0x1c   : > { %808 = vmatpush3.bf16.msra.mxu1 %v854_v12  ;;  %823 = vmatprep.subr.bf16.mxu0 %v860_v18 }
  0x1d   : > { %809 = vmatprep.subr.bf16.mxu1 %v855_v13 }
  0x1f   : > { %824 = vmatpush3.bf16.msra.mxu0 %v860_v18 }
  0x20   : > { %810 = vmatpush3.bf16.msra.mxu1 %v855_v13  ;;  %825 = vmatprep.subr.bf16.mxu0 %v861_v19 }
  0x21   : > { %811 = vmatprep.subr.bf16.mxu1 %v856_v14 }
  0x23   : > { %826 = vmatpush3.bf16.msra.mxu0 %v861_v19 }
  0x24   : > { %812 = vmatpush3.bf16.msra.mxu1 %v856_v14  ;;  %827 = vmatprep.subr.bf16.mxu0 %v862_v39 }
  0x27   : > { %828 = vmatpush3.bf16.msra.mxu0 %v862_v39 }
  0x28   : > { %829 = vmatprep.subr.bf16.mxu0 %v863_v40 }
  0x2b   : > { %830 = vmatpush3.bf16.msra.mxu0 %v863_v40 }
  0x2c   : > { %831 = vmatprep.subr.bf16.mxu0 %v864_v41 }
  0x2f   : > { %832 = vmatpush3.bf16.msra.mxu0 %v864_v41 }
  0xe5   : > { %v793_v21 = vpop.f32.mrb[0].mxu0 }
  0xe6   : > { %v381_v22 = vadd.f32 %v793_v21, %v736_v20  ;;  %v375_v23 = vpop.f32.mrb[1].mxu0 }
  0xe7   : > { %v376_v24 = vadd.f32 %v736_v20, %v375_v23 }
  0xe8   : > { %v399_v25 = vmul.f32 0.01, %v381_v22  ;;  %vm395_vm1 = vcmp.ge.f32.partialorder %v381_v22, 0.0 }
  0xe9   : > { %v398_v26 = vmul.f32 0.01, %v376_v24  ;;  %v796_v27 = vpop.f32.mrb[2].mxu0  ;;  %vm394_vm2 = vcmp.ge.f32.partialorder %v376_v24, 0.0 }
  0xea   : > { %v391_v28 = vadd.f32 %v796_v27, %v736_v20  ;;  %v385_v29 = vpop.f32.mrb[3].mxu0  ;;  %v403_v30 = vsel %vm395_vm1, %v381_v22, %v399_v25 }
  0xeb   : > { %v386_v31 = vadd.f32 %v736_v20, %v385_v29  ;;  %v402_v32 = vsel %vm394_vm2, %v376_v24, %v398_v26 }
  0xec   : > { %vm397_vm3 = vcmp.ge.f32.partialorder %v391_v28, 0.0  ;;  %v401_v33 = vmul.f32 0.01, %v391_v28  ;;  %v406_v34 = vpack.c.bf16 %v403_v30, %v402_v32 }
  0xed   : > { %vm396_vm4 = vcmp.ge.f32.partialorder %v386_v31, 0.0  ;;  %v400_v35 = vmul.f32 0.01, %v386_v31 }
  0xee   : > { %813 = vmatprep.mubr.bf16.mxu1 %v406_v34  ;;  %v405_v36 = vsel %vm397_vm3, %v391_v28, %v401_v33 }
  0xef   : > { %v404_v37 = vsel %vm396_vm4, %v386_v31, %v400_v35 }
  0xf0   : > { %v407_v38 = vpack.c.bf16 %v405_v36, %v404_v37 }
  0xf2   : > { %814 = vmatmul.mubr.bf16.vlgmr.msra.gmra.mrb[0].mxu1 %v407_v38 }
 0x1c5   : > { %v815_v43 = vpop.f32.mrb[0].mxu1 }
 0x1c6   : > { %v522_v44 = vadd.f32 %v815_v43, %v741_v42  ;;  %v513_v45 = vpop.f32.mrb[1].mxu1 }
 0x1c7   : > { %v514_v46 = vadd.f32 %v741_v42, %v513_v45  ;;  %v816_v47 = vpop.f32.mrb[2].mxu1 }
 0x1c8   : > { %v534_v48 = vmul.f32 0.01, %v522_v44  ;;  %v525_v49 = vadd.f32 %v816_v47, %v741_v42  ;;  %v516_v50 = vpop.f32.mrb[3].mxu1  ;;  %vm530_vm5 = vcmp.ge.f32.partialorder %v522_v44, 0.0 }
 0x1c9   : > { %v532_v51 = vmul.f32 0.01, %v514_v46  ;;  %v517_v52 = vadd.f32 %v741_v42, %v516_v50  ;;  %vm528_vm6 = vcmp.ge.f32.partialorder %v514_v46, 0.0 }
 0x1ca   : > { %vm531_vm7 = vcmp.ge.f32.partialorder %v525_v49, 0.0  ;;  %v535_v53 = vmul.f32 0.01, %v525_v49  ;;  %v538_v55 = vsel %vm530_vm5, %v522_v44, %v534_v48 }
 0x1cb   : > { %vm529_vm8 = vcmp.ge.f32.partialorder %v517_v52, 0.0  ;;  %v533_v54 = vmul.f32 0.01, %v517_v52  ;;  %v536_v58 = vsel %vm528_vm6, %v514_v46, %v532_v51 }
 0x1cc   : > { %v539_v56 = vsel %vm531_vm7, %v525_v49, %v535_v53 }
 0x1cd   : > { %v541_v57 = vpack.c.bf16 %v539_v56, %v538_v55  ;;  %v537_v59 = vsel %vm529_vm8, %v517_v52, %v533_v54 }
 0x1ce   : > { %v540_v60 = vpack.c.bf16 %v537_v59, %v536_v58 }
 0x1d0   : > { %833 = vmatprep.mubr.bf16.mxu0 %v540_v60 }
 0x1d1   : > { %834 = vmatmul.mubr.bf16.vlgmr.msra.gmra.mrb[4].mxu0 %v541_v57 }
 0x2a4   : > { %v835_v62 = vpop.f32.mrb[4].mxu0 }
 0x2a5   : > { %v647_v63 = vpop.f32.mrb[5].mxu0  ;;  %v656_v2 = vadd.f32 %v835_v62, %v750_v61 }
 0x2a6   : > { %v648_v0 = vadd.f32 %v750_v61, %v647_v63  ;;  %v836_v1 = vpop.f32.mrb[6].mxu0 }
 0x2a7   : > { %v650_v3 = vpop.f32.mrb[7].mxu0  ;;  %v659_v4 = vadd.f32 %v836_v1, %v750_v61 }
 0x2a8   : > { %865 = vtanh.f32 %v648_v0  ;;  %v651_v5 = vadd.f32 %v750_v61, %v650_v3 }
 0x2aa   : > { %867 = vtanh.f32 %v651_v5 }
 0x2ab   : > { %869 = vtanh.f32 %v656_v2 }
 0x2ac   : > { %871 = vtanh.f32 %v659_v4 }
 0x2b2   : > { %v866_v6 = vpop.eup %865 }
 0x2b3   : > { %667 = vst.msk [vmem:[%s280_s11] sm:$0xff] %vm666_vm9, %v866_v6 }
 0x2b4   : > { %v868_v7 = vpop.eup %867 }
 0x2b5   : > { %v870_v8 = vpop.eup %869  ;;  %668 = vst.msk [vmem:[%s280_s11 + $0x8] sm:$0xff] %vm666_vm9, %v868_v7 }
 0x2b6   : > { %v872_v9 = vpop.eup %871  ;;  %669 = vst.msk [vmem:[%s280_s11 + $0x10] sm:$0xff] %vm666_vm9, %v870_v8 }
 0x2b7   : > { %670 = vst.msk [vmem:[%s280_s11 + $0x18] sm:$0xff] %vm666_vm9, %v872_v9 }
 0x2b8 PF: > { %s17_s24 = sadd.s32 1, %s879_s24  }
 0x2b9   : > { %p14_p4 = scmp.ge.s32.totalorder %s17_s24, 4  }
 0x2bb   :  { %16 = sbr.rel (!%p14_p4) target bundleno = 1 (0x1), region = 78 }

</bundles_post_ra>
